<compile_context>
chip_gen: v5e
topology: v5e:2x2
jax: 0.10.0
libtpu: 0.0.40
codegen_flags: <defaults>
</compile_context>

<pallas_src>
import numpy as np
import jax
import jax.numpy as jnp
from jax import lax
from jax.experimental import pallas as pl
from jax.experimental.pallas import tpu as pltpu


_VMEM_LIMIT_BYTES = 32 * 1024 * 1024   # <= physical VMEM on v5e/v6e (128 MiB) and v7x (64 MiB)


# ---------------------------------------------------------------------------
# Tile sizing: VMEM-budget aware, lane (128) aligned, small ragged tail preferred.
# ---------------------------------------------------------------------------
def _pick_hw_tile(hw, sum_c, cout, max_tile=2048, block_budget_bytes=16 << 20):
    """Spatial (lane-axis) tile size.

    Budget: double-buffered f32 x blocks (sum_c rows) + double-buffered f32 output block
    (cout rows) => 8*(sum_c+cout) bytes per spatial column.  Pick the largest multiple of 128
    within the budget and <= max_tile (2048 keeps headroom under v7x's 64 MiB VMEM); among those
    prefer a tile whose ragged tail is <= 12.5% of hw.
    """
    hw128 = -(-hw // 128) * 128
    per_col_bytes = 8 * (sum_c + cout)
    cap = min(max_tile, (block_budget_bytes // per_col_bytes) // 128 * 128, hw128)
    cap = max(128, cap)
    if hw <= cap and hw % 128 != 0:
        return hw                       # one full-extent tile, no ragged edge
    best_t, best_pad = 128, None
    t = cap
    while t >= 128:
        pad = (-hw) % t
        if pad * 8 <= hw:               # ragged tail <= 12.5% of hw
            return t
        if best_pad is None or pad < best_pad:
            best_t, best_pad = t, pad
        t -= 128
    return best_t


# ---------------------------------------------------------------------------
# Pass 1: 1x1 conv + per-partial shifted batch statistics, accumulated in VMEM scratch
# across the 'arbitrary' tile axis.  No conv output is materialized in HBM.
# ---------------------------------------------------------------------------
def _make_stats_kernel(n_inputs, *, hw, t_hw, n_split, tiles_per_split, ragged, cout):
    split_cols = tiles_per_split * t_hw

    def kernel(*refs):
        x_refs = refs[:n_inputs]
        w_refs = refs[n_inputs:2 * n_inputs]
        mean_ref = refs[2 * n_inputs]
        m2_ref = refs[2 * n_inputs + 1]
        shift_s, a_s, b_s = refs[2 * n_inputs + 2:2 * n_inputs + 5]

        p = pl.program_id(0)
        t = pl.program_id(1)

        # 1x1 conv on this tile: sum of per-input (Cout,Ci)@(Ci,t_hw) matmuls.
        y = jnp.dot(w_refs[0][...], x_refs[0][0], preferred_element_type=jnp.float32)
        for i in range(1, n_inputs):
            y = y + jnp.dot(w_refs[i][...], x_refs[i][0], preferred_element_type=jnp.float32)

        s_idx = p % n_split
        col0 = (s_idx * tiles_per_split + t) * t_hw

        if ragged:
            col = col0 + lax.broadcasted_iota(jnp.int32, (cout, t_hw), 1)
            valid = col < hw
            n_valid = jnp.minimum(hw - col0, t_hw).astype(jnp.float32)
            masked = lambda v: jnp.where(valid, v, 0.0)
        else:
            n_valid = float(t_hw)
            masked = lambda v: v

        @pl.when(t == 0)
        def _init():
            # Shift = mean of the first tile (numerically stabilises the variance).
            shift_s[...] = jnp.sum(masked(y), axis=1, keepdims=True) / n_valid
            a_s[...] = jnp.zeros_like(a_s)
            b_s[...] = jnp.zeros_like(b_s)

        d = masked(y - shift_s[...])
        a_s[...] += jnp.sum(d, axis=1, keepdims=True)
        b_s[...] += jnp.sum(d * d, axis=1, keepdims=True)

        @pl.when(t == pl.num_programs(1) - 1)
        def _flush():
            if ragged:
                count = jnp.minimum(hw - s_idx * split_cols, split_cols).astype(jnp.float32)
            else:
                count = float(split_cols)
            a = a_s[...]
            mean_ref[0] = shift_s[...] + a / count         # per-partial mean   (Cout, 1)
            m2_ref[0] = b_s[...] - a * a / count           # per-partial M2     (Cout, 1)

    return kernel


def _conv_batch_stats(xs3d, ws, cout, t_hw, hw, n_split):
    n_inputs = len(xs3d)
    n = xs3d[0].shape[0]
    tiles_total = -(-hw // t_hw)
    tiles_per_split = tiles_total // n_split
    n_partials = n * n_split
    ragged = (hw % t_hw) != 0

    def x_map(p, t):
        return (p // n_split, 0, (p % n_split) * tiles_per_split + t)

    in_specs = []
    for x in xs3d:
        ci = x.shape[1]
        in_specs.append(pl.BlockSpec((1, ci, t_hw), x_map))
    for wmat in ws:
        ci = wmat.shape[1]
        in_specs.append(pl.BlockSpec((cout, ci), lambda p, t: (0, 0)))

    stat_spec = pl.BlockSpec((1, cout, 1), lambda p, t: (p, 0, 0))

    return pl.pallas_call(
        _make_stats_kernel(n_inputs, hw=hw, t_hw=t_hw, n_split=n_split,
                           tiles_per_split=tiles_per_split, ragged=ragged, cout=cout),
        out_shape=(jax.ShapeDtypeStruct((n_partials, cout, 1), jnp.float32),
                   jax.ShapeDtypeStruct((n_partials, cout, 1), jnp.float32)),
        grid_spec=pltpu.PrefetchScalarGridSpec(
            num_scalar_prefetch=0,
            grid=(n_partials, tiles_per_split),
            in_specs=in_specs,
            out_specs=[stat_spec, stat_spec],
            scratch_shapes=[pltpu.VMEM((cout, 1), jnp.float32),
                            pltpu.VMEM((cout, 1), jnp.float32),
                            pltpu.VMEM((cout, 1), jnp.float32)]),
        compiler_params=pltpu.CompilerParams(
            dimension_semantics=("parallel", "arbitrary"),
            vmem_limit_bytes=_VMEM_LIMIT_BYTES),
    )(*xs3d, *ws)


# ---------------------------------------------------------------------------
# Pass 2: conv with BN scale folded into the weights + bias + ReLU, lane-dense output.
# ---------------------------------------------------------------------------
def _make_out_kernel(n_inputs):
    def kernel(*refs):
        x_refs = refs[:n_inputs]
        w_refs = refs[n_inputs:2 * n_inputs]
        bias_ref = refs[2 * n_inputs]
        o_ref = refs[2 * n_inputs + 1]

        y = jnp.dot(w_refs[0][...], x_refs[0][0], preferred_element_type=jnp.float32)
        for i in range(1, n_inputs):
            y = y + jnp.dot(w_refs[i][...], x_refs[i][0], preferred_element_type=jnp.float32)
        o_ref[0] = jnp.maximum(y + bias_ref[...], 0.0).astype(o_ref.dtype)
    return kernel


def _conv_bn_relu(xs3d, ws_scaled, bias_col, cout, t_hw, hw):
    n_inputs = len(xs3d)
    n = xs3d[0].shape[0]
    tiles_total = -(-hw // t_hw)

    in_specs = []
    for x in xs3d:
        ci = x.shape[1]
        in_specs.append(pl.BlockSpec((1, ci, t_hw), lambda b, j: (b, 0, j)))
    for wmat in ws_scaled:
        ci = wmat.shape[1]
        in_specs.append(pl.BlockSpec((cout, ci), lambda b, j: (0, 0)))
    in_specs.append(pl.BlockSpec((cout, 1), lambda b, j: (0, 0)))

    return pl.pallas_call(
        _make_out_kernel(n_inputs),
        out_shape=jax.ShapeDtypeStruct((n, cout, hw), jnp.float32),
        grid_spec=pltpu.PrefetchScalarGridSpec(
            num_scalar_prefetch=0,
            grid=(n, tiles_total),
            in_specs=in_specs,
            out_specs=pl.BlockSpec((1, cout, t_hw), lambda b, j: (b, 0, j)),
        ),
        compiler_params=pltpu.CompilerParams(
            dimension_semantics=("parallel", "parallel"),
            vmem_limit_bytes=_VMEM_LIMIT_BYTES),
    )(*xs3d, *ws_scaled, bias_col)


# ---------------------------------------------------------------------------
# Single-pass fused kernel for small problems: x read once, exact two-pass statistics.
# ---------------------------------------------------------------------------
def _make_fused_kernel(n_inputs, n, eps):
    def kernel(*refs):
        x_refs = refs[:n_inputs]
        w_refs = refs[n_inputs:2 * n_inputs]
        gamma_ref = refs[2 * n_inputs]
        beta_ref = refs[2 * n_inputs + 1]
        o_ref = refs[2 * n_inputs + 2]
        y_ref = refs[2 * n_inputs + 3]           # VMEM scratch (n, Cout, HW)

        for b in range(n):                       # static unroll; fast path only for small n
            acc = jnp.dot(w_refs[0][...], x_refs[0][b], preferred_element_type=jnp.float32)
            for i in range(1, n_inputs):
                acc = acc + jnp.dot(w_refs[i][...], x_refs[i][b],
                                    preferred_element_type=jnp.float32)
            y_ref[b] = acc

        y = y_ref[...]                           # (n, Cout, HW)
        m = float(y.shape[0] * y.shape[2])
        mean = jnp.sum(jnp.sum(y, axis=2, keepdims=True), axis=0, keepdims=True) / m
        d = y - mean
        var = jnp.sum(jnp.sum(d * d, axis=2, keepdims=True), axis=0, keepdims=True) / m
        scale = gamma_ref[...] * lax.rsqrt(var + eps)       # (1, Cout, 1)
        bias = beta_ref[...] - mean * scale
        o_ref[...] = jnp.maximum(y * scale + bias, 0.0).astype(o_ref.dtype)

    return kernel


def _fused_small(xs3d, ws, bn_gamma, bn_beta, cout, eps):
    n_inputs = len(xs3d)
    n, _, hw = xs3d[0].shape
    return pl.pallas_call(
        _make_fused_kernel(n_inputs, n, eps),
        out_shape=jax.ShapeDtypeStruct((n, cout, hw), jnp.float32),
        scratch_shapes=[pltpu.VMEM((n, cout, hw), jnp.float32)],
    )(*xs3d, *ws, bn_gamma.reshape(cout, 1), bn_beta.reshape(cout, 1))


# ---------------------------------------------------------------------------
# Root forward: cat(channels) -> 1x1 conv (no bias) -> BatchNorm2d(train) -> ReLU
# ---------------------------------------------------------------------------
def root_forward(xs, conv_w, bn_gamma, bn_beta, eps=1e-5, single_pass=None):
    """xs: list of NCHW float32 arrays; conv_w: (Cout, sum(C_i), 1, 1); returns NCHW."""
    # TODO(synk): kernel_size > 1 (spatial conv with padding) is not implemented; the module's
    # default kernel_size=1 is what this kernel covers.
    # TODO(synk): nn.BatchNorm2d's running_mean/running_var buffer updates are not produced;
    # only the forward activation (train-mode batch statistics) is computed.
    n, _, h, w = xs[0].shape
    hw = h * w
    cout = conv_w.shape[0]

    # Split the conv weight per input along the (conceptually concatenated) channel axis,
    # so no activation concatenate is ever materialized in HBM.
    w2d = conv_w.reshape(cout, -1)
    ws, off = [], 0
    for x in xs:
        ci = x.shape[1]
        ws.append(w2d[:, off:off + ci])
        off += ci
    sum_c = off

    # NCHW -> (N, C, H*W): contiguous reshape, no transpose.
    xs3d = [x.reshape(x.shape[0], x.shape[1], hw) for x in xs]

    # Small problems: one fused kernel (x read once, exact two-pass statistics).
    fused_bytes = 4 * n * hw * (sum_c + 2 * cout)
    if single_pass is None:
        single_pass = (fused_bytes <= (4 << 20)) and n <= 32
    if single_pass:
        o3d = _fused_small(xs3d, ws, bn_gamma, bn_beta, cout, eps)
        return o3d.reshape(n, cout, h, w)

    # ---- Two-pass path ----
    t_hw = _pick_hw_tile(hw, sum_c, cout)
    tiles_total = -(-hw // t_hw)

    # Guarantee a 'parallel' grid axis of extent >= 2 in pass 1 (v7x has 2 TensorCores).
    n_split = 1
    if n < 2 and tiles_total >= 2:
        for d in range(2, tiles_total + 1):
            if tiles_total % d == 0:
                n_split = d
                break
    tiles_per_split = tiles_total // n_split
    n_partials = n * n_split

    # Pass 1: conv + per-partial shifted batch statistics (accumulated in VMEM scratch).
    mean_p, m2_p = _conv_batch_stats(xs3d, ws, cout, t_hw, hw, n_split)
    mean_p = mean_p[:, :, 0]                     # (P, Cout)
    m2_p = m2_p[:, :, 0]                         # (P, Cout)

    # Tiny glue: Chan-combine the partials, compute the BN affine, fold the scale into W.
    split_start = (np.arange(n_partials) % n_split) * (tiles_per_split * t_hw)
    counts = jnp.asarray(
        np.minimum(tiles_per_split * t_hw, hw - split_start).astype(np.float32))   # (P,)
    m = float(n * hw)
    mean = jnp.sum(counts[:, None] * mean_p, axis=0) / m                            # (Cout,)
    m2 = (jnp.sum(m2_p, axis=0)
          + jnp.sum(counts[:, None] * (mean_p - mean[None, :]) ** 2, axis=0))
    var = jnp.maximum(m2 / m, 0.0)               # biased variance (BN train-mode normalization)
    scale = bn_gamma / jnp.sqrt(var + eps)
    bias = bn_beta - mean * scale
    ws_scaled = [scale[:, None] * wi for wi in ws]

    # Pass 2: conv (BN scale folded into W) + bias + ReLU, written straight to the output.
    o3d = _conv_bn_relu(xs3d, ws_scaled, bias[:, None], cout, t_hw, hw)
    return o3d.reshape(n, cout, h, w)


# ---------------------------------------------------------------------------
# Reference (plain JAX) for self-check
# ---------------------------------------------------------------------------
def root_forward_ref(xs, conv_w, bn_gamma, bn_beta, eps=1e-5):
    x = jnp.concatenate(xs, axis=1)                        # (N, Cin, H, W)
    cout, cin = conv_w.shape[:2]
    w2d = conv_w.reshape(cout, cin)
    conv = jnp.einsum('nchw,oc->nohw', x, w2d)
    mean = conv.mean(axis=(0, 2, 3), keepdims=True)
    var = ((conv - mean) ** 2).mean(axis=(0, 2, 3), keepdims=True)
    norm = (conv - mean) / jnp.sqrt(var + eps)
    out = norm * bn_gamma[None, :, None, None] + bn_beta[None, :, None, None]
    return jnp.maximum(out, 0.0)


if __name__ == "__main__":
    key = jax.random.PRNGKey(0)
    keys = jax.random.split(key, 10)

    # --- Case 1: Root(in=8, out=16) on two 4-channel 16x16 maps (small -> fused single-pass).
    N, H, W = 2, 16, 16
    C1, C2, Cout = 4, 4, 16
    x1 = jax.random.normal(keys[0], (N, C1, H, W), dtype=jnp.float32)
    x2 = jax.random.normal(keys[1], (N, C2, H, W), dtype=jnp.float32)
    conv_w = jax.random.normal(keys[2], (Cout, C1 + C2, 1, 1), dtype=jnp.float32) * 0.1
    gamma = 1.0 + 0.1 * jax.random.normal(keys[3], (Cout,), dtype=jnp.float32)
    beta = 0.1 * jax.random.normal(keys[4], (Cout,), dtype=jnp.float32)

    ref1 = root_forward_ref([x1, x2], conv_w, gamma, beta)

    out_fused = jax.block_until_ready(root_forward([x1, x2], conv_w, gamma, beta))
    assert out_fused.shape == (N, Cout, H, W)
    assert jnp.allclose(out_fused, ref1, atol=1e-4, rtol=1e-4), "fused path mismatch"

    out_two = jax.block_until_ready(
        root_forward([x1, x2], conv_w, gamma, beta, single_pass=False))
    assert jnp.allclose(out_two, ref1, atol=1e-4, rtol=1e-4), "two-pass path mismatch"

    # --- Case 2: uneven channel split + H*W with a ragged spatial tile (two-pass path).
    N2, H2, W2 = 2, 48, 48
    C3, C4, Cout2 = 4, 6, 16
    x3 = jax.random.normal(keys[5], (N2, C3, H2, W2), dtype=jnp.float32)
    x4 = jax.random.normal(keys[6], (N2, C4, H2, W2), dtype=jnp.float32)
    conv_w2 = jax.random.normal(keys[7], (Cout2, C3 + C4, 1, 1), dtype=jnp.float32) * 0.1
    gamma2 = 1.0 + 0.1 * jax.random.normal(keys[8], (Cout2,), dtype=jnp.float32)
    beta2 = 0.1 * jax.random.normal(keys[9], (Cout2,), dtype=jnp.float32)

    ref2 = root_forward_ref([x3, x4], conv_w2, gamma2, beta2)
    out2 = jax.block_until_ready(
        root_forward([x3, x4], conv_w2, gamma2, beta2, single_pass=False))
    assert out2.shape == (N2, Cout2, H2, W2)
    assert jnp.allclose(out2, ref2, atol=1e-4, rtol=1e-4), "ragged two-pass mismatch"

    print("KERNEL_OK")
</pallas_src>

<mosaic_0001>
module attributes {stable_mosaic.version = 11 : i64} {
  func.func @kernel(%arg0: memref<2x4x256xf32, #tpu.memory_space<vmem>>, %arg1: memref<2x4x256xf32, #tpu.memory_space<vmem>>, %arg2: memref<16x4xf32, #tpu.memory_space<vmem>>, %arg3: memref<16x4xf32, #tpu.memory_space<vmem>>, %arg4: memref<16x1xf32, #tpu.memory_space<vmem>>, %arg5: memref<16x1xf32, #tpu.memory_space<vmem>>, %arg6: memref<2x16x256xf32, #tpu.memory_space<vmem>>, %arg7: memref<2x16x256xf32, #tpu.memory_space<vmem>>) attributes {dimension_semantics = [], scalar_prefetch = 0 : i64, scratch_operands = 1 : i64, tpu.core_type = #tpu.core_type<tc>} {
    %c0 = arith.constant 0 : index
    %c0_0 = arith.constant 0 : index
    %0 = vector.load %arg2[%c0, %c0_0] : memref<16x4xf32, #tpu.memory_space<vmem>>, vector<16x4xf32>
    %c0_1 = arith.constant 0 : index
    %c0_2 = arith.constant 0 : index
    %c0_3 = arith.constant 0 : index
    %1 = vector.load %arg0[%c0_1, %c0_2, %c0_3] : memref<2x4x256xf32, #tpu.memory_space<vmem>>, vector<1x4x256xf32>
    %2 = vector.shape_cast %1 : vector<1x4x256xf32> to vector<4x256xf32>
    %cst = arith.constant dense<0.000000e+00> : vector<16x256xf32>
    %3 = tpu.matmul %0, %2, %cst {dimension_numbers = #tpu.dot_dimension_numbers<[1], [0], [0], [1], [0, 0, 1, 1], [], []>} : vector<16x4xf32>, vector<4x256xf32>, vector<16x256xf32> -> vector<16x256xf32>
    %c0_4 = arith.constant 0 : index
    %c0_5 = arith.constant 0 : index
    %4 = vector.load %arg3[%c0_4, %c0_5] : memref<16x4xf32, #tpu.memory_space<vmem>>, vector<16x4xf32>
    %c0_6 = arith.constant 0 : index
    %c0_7 = arith.constant 0 : index
    %c0_8 = arith.constant 0 : index
    %5 = vector.load %arg1[%c0_6, %c0_7, %c0_8] : memref<2x4x256xf32, #tpu.memory_space<vmem>>, vector<1x4x256xf32>
    %6 = vector.shape_cast %5 : vector<1x4x256xf32> to vector<4x256xf32>
    %cst_9 = arith.constant dense<0.000000e+00> : vector<16x256xf32>
    %7 = tpu.matmul %4, %6, %cst_9 {dimension_numbers = #tpu.dot_dimension_numbers<[1], [0], [0], [1], [0, 0, 1, 1], [], []>} : vector<16x4xf32>, vector<4x256xf32>, vector<16x256xf32> -> vector<16x256xf32>
    %8 = arith.addf %3, %7 : vector<16x256xf32>
    %c0_10 = arith.constant 0 : index
    %c0_11 = arith.constant 0 : index
    %c0_12 = arith.constant 0 : index
    %9 = vector.load %arg7[%c0_10, %c0_11, %c0_12] : memref<2x16x256xf32, #tpu.memory_space<vmem>>, vector<1x16x256xf32>
    %10 = vector.shape_cast %9 : vector<1x16x256xf32> to vector<16x256xf32>
    %11 = vector.shape_cast %8 : vector<16x256xf32> to vector<1x16x256xf32>
    tpu.vector_store %arg7[%c0_10, %c0_11, %c0_12], %11 {strides = array<i32>} : memref<2x16x256xf32, #tpu.memory_space<vmem>>, vector<1x16x256xf32>,
    %c0_13 = arith.constant 0 : index
    %c0_14 = arith.constant 0 : index
    %12 = vector.load %arg2[%c0_13, %c0_14] : memref<16x4xf32, #tpu.memory_space<vmem>>, vector<16x4xf32>
    %c1 = arith.constant 1 : index
    %c0_15 = arith.constant 0 : index
    %c0_16 = arith.constant 0 : index
    %13 = vector.load %arg0[%c1, %c0_15, %c0_16] : memref<2x4x256xf32, #tpu.memory_space<vmem>>, vector<1x4x256xf32>
    %14 = vector.shape_cast %13 : vector<1x4x256xf32> to vector<4x256xf32>
    %cst_17 = arith.constant dense<0.000000e+00> : vector<16x256xf32>
    %15 = tpu.matmul %12, %14, %cst_17 {dimension_numbers = #tpu.dot_dimension_numbers<[1], [0], [0], [1], [0, 0, 1, 1], [], []>} : vector<16x4xf32>, vector<4x256xf32>, vector<16x256xf32> -> vector<16x256xf32>
    %c0_18 = arith.constant 0 : index
    %c0_19 = arith.constant 0 : index
    %16 = vector.load %arg3[%c0_18, %c0_19] : memref<16x4xf32, #tpu.memory_space<vmem>>, vector<16x4xf32>
    %c1_20 = arith.constant 1 : index
    %c0_21 = arith.constant 0 : index
    %c0_22 = arith.constant 0 : index
    %17 = vector.load %arg1[%c1_20, %c0_21, %c0_22] : memref<2x4x256xf32, #tpu.memory_space<vmem>>, vector<1x4x256xf32>
    %18 = vector.shape_cast %17 : vector<1x4x256xf32> to vector<4x256xf32>
    %cst_23 = arith.constant dense<0.000000e+00> : vector<16x256xf32>
    %19 = tpu.matmul %16, %18, %cst_23 {dimension_numbers = #tpu.dot_dimension_numbers<[1], [0], [0], [1], [0, 0, 1, 1], [], []>} : vector<16x4xf32>, vector<4x256xf32>, vector<16x256xf32> -> vector<16x256xf32>
    %20 = arith.addf %15, %19 : vector<16x256xf32>
    %c1_24 = arith.constant 1 : index
    %c0_25 = arith.constant 0 : index
    %c0_26 = arith.constant 0 : index
    %21 = vector.load %arg7[%c1_24, %c0_25, %c0_26] : memref<2x16x256xf32, #tpu.memory_space<vmem>>, vector<1x16x256xf32>
    %22 = vector.shape_cast %21 : vector<1x16x256xf32> to vector<16x256xf32>
    %23 = vector.shape_cast %20 : vector<16x256xf32> to vector<1x16x256xf32>
    tpu.vector_store %arg7[%c1_24, %c0_25, %c0_26], %23 {strides = array<i32>} : memref<2x16x256xf32, #tpu.memory_space<vmem>>, vector<1x16x256xf32>,
    %c0_27 = arith.constant 0 : index
    %c0_28 = arith.constant 0 : index
    %c0_29 = arith.constant 0 : index
    %24 = vector.load %arg7[%c0_27, %c0_28, %c0_29] : memref<2x16x256xf32, #tpu.memory_space<vmem>>, vector<2x16x256xf32>
    %cst_30 = arith.constant dense<0.000000e+00> : vector<2x16xf32>
    %25 = vector.multi_reduction <add>, %24, %cst_30 [2] : vector<2x16x256xf32> to vector<2x16xf32>
    %26 = vector.shape_cast %25 : vector<2x16xf32> to vector<2x16x1xf32>
    %cst_31 = arith.constant dense<0.000000e+00> : vector<16x1xf32>
    %27 = vector.multi_reduction <add>, %26, %cst_31 [0] : vector<2x16x1xf32> to vector<16x1xf32>
    %28 = vector.shape_cast %27 : vector<16x1xf32> to vector<1x16x1xf32>
    %cst_32 = arith.constant 5.120000e+02 : f32
    %29 = vector.broadcast %cst_32 : f32 to vector<1x16x1xf32>
    %30 = arith.divf %28, %29 : vector<1x16x1xf32>
    %31 = vector.broadcast %30 : vector<1x16x1xf32> to vector<2x16x256xf32>
    %32 = arith.subf %24, %31 : vector<2x16x256xf32>
    %33 = arith.mulf %32, %32 : vector<2x16x256xf32>
    %cst_33 = arith.constant dense<0.000000e+00> : vector<2x16xf32>
    %34 = vector.multi_reduction <add>, %33, %cst_33 [2] : vector<2x16x256xf32> to vector<2x16xf32>
    %35 = vector.shape_cast %34 : vector<2x16xf32> to vector<2x16x1xf32>
    %cst_34 = arith.constant dense<0.000000e+00> : vector<16x1xf32>
    %36 = vector.multi_reduction <add>, %35, %cst_34 [0] : vector<2x16x1xf32> to vector<16x1xf32>
    %37 = vector.shape_cast %36 : vector<16x1xf32> to vector<1x16x1xf32>
    %cst_35 = arith.constant 5.120000e+02 : f32
    %38 = vector.broadcast %cst_35 : f32 to vector<1x16x1xf32>
    %39 = arith.divf %37, %38 : vector<1x16x1xf32>
    %c0_36 = arith.constant 0 : index
    %c0_37 = arith.constant 0 : index
    %40 = vector.load %arg4[%c0_36, %c0_37] : memref<16x1xf32, #tpu.memory_space<vmem>>, vector<16x1xf32>
    %cst_38 = arith.constant 9.99999974E-6 : f32
    %41 = vector.broadcast %cst_38 : f32 to vector<1x16x1xf32>
    %42 = arith.addf %39, %41 : vector<1x16x1xf32>
    %43 = math.rsqrt %42 : vector<1x16x1xf32>
    %44 = vector.shape_cast %40 : vector<16x1xf32> to vector<1x16x1xf32>
    %45 = arith.mulf %44, %43 : vector<1x16x1xf32>
    %c0_39 = arith.constant 0 : index
    %c0_40 = arith.constant 0 : index
    %46 = vector.load %arg5[%c0_39, %c0_40] : memref<16x1xf32, #tpu.memory_space<vmem>>, vector<16x1xf32>
    %47 = arith.mulf %30, %45 : vector<1x16x1xf32>
    %48 = vector.shape_cast %46 : vector<16x1xf32> to vector<1x16x1xf32>
    %49 = arith.subf %48, %47 : vector<1x16x1xf32>
    %50 = vector.broadcast %45 : vector<1x16x1xf32> to vector<2x16x256xf32>
    %51 = arith.mulf %24, %50 : vector<2x16x256xf32>
    %52 = vector.broadcast %49 : vector<1x16x1xf32> to vector<2x16x256xf32>
    %53 = arith.addf %51, %52 : vector<2x16x256xf32>
    %cst_41 = arith.constant 0.000000e+00 : f32
    %54 = vector.broadcast %cst_41 : f32 to vector<2x16x256xf32>
    %55 = arith.maximumf %53, %54 : vector<2x16x256xf32>
    %c0_42 = arith.constant 0 : index
    %c0_43 = arith.constant 0 : index
    %c0_44 = arith.constant 0 : index
    %56 = vector.load %arg6[%c0_42, %c0_43, %c0_44] : memref<2x16x256xf32, #tpu.memory_space<vmem>>, vector<2x16x256xf32>
    tpu.vector_store %arg6[%c0_42, %c0_43, %c0_44], %55 {strides = array<i32>} : memref<2x16x256xf32, #tpu.memory_space<vmem>>, vector<2x16x256xf32>,
    return
  }
}

</mosaic_0001>

<bundles_post_ra>
// kernel: tpu_custom_call.1
= control target key start
LH: loop header
LB: loop body
LE: loop exit
PB: predicated region body
PF: predicated region fallthrough
CT: control target
= control target key end

     0   :  { %s670_s0 = inlined_call_operand.vmem [shape: f32[2,4,256], index: 0, kind: input, shape index: {}]   ;;  %s671_s1 = inlined_call_operand.vmem [shape: f32[2,4,256], index: 1, kind: input, shape index: {}]   ;;  %s672_s2 = inlined_call_operand.vmem [shape: f32[16,4], index: 2, kind: input, shape index: {}]   ;;  %s673_s3 = inlined_call_operand.vmem [shape: f32[16,4], index: 3, kind: input, shape index: {}]   ;;  %s674_s4 = inlined_call_operand.vmem [shape: f32[16,1], index: 4, kind: input, shape index: {}]   ;;  %s675_s5 = inlined_call_operand.vmem [shape: f32[16,1], index: 5, kind: input, shape index: {}]   ;;  %s676_s6 = inlined_call_operand.hbm [shape: f32[2,16,256], index: 6, kind: output, shape index: {}]  }
   0x1   :  { %v29_v0 = vld [vmem:[%s671_s1] sm:$0xff] }
   0x2   :  { %31 = vst [vmem:[#allocation1] ss:$2 sm:$0xff] %v29_v0 }
   0x3   :  { %11 = vsyncpa [#allocation4], 0  ;;  %v26_v1 = vld [vmem:[%s670_s0] sm:$0xff]  ;;  %vm41_vm0 = vcmask 1043456   ;;  %vm34_vm1 = vcmask 31744   ;;  %v467_v5 = vld [vmem:[%s671_s1 + $0x8] sm:$0xff] }
   0x4   :  { %v27_v2 = vld [vmem:[%s673_s3] sm:$0xff]  ;;  %v28_v7 = vld [vmem:[%s673_s3 + $0x8] sm:$0xff]  ;;  %v520_v44 = vmov 512.0   ;;  %s442_s19 = sshll.u32 %s676_s6, 4  ;;  %s523_s20 = smov 256   ;;  %s443_s19 = int_to_ptr.hbm [resolvable:$true] %s442_s19 }
   0x5   :  { %v24_v6 = vld [vmem:[%s672_s2] sm:$0xff]  ;;  %v466_v10 = vld [vmem:[%s670_s0 + $0x8] sm:$0xff]  ;;  %488 = vrcp.f32 %v520_v44  ;;  %s524_s21 = smov 16  }
   0x6   :  { %v25_v11 = vld [vmem:[%s672_s2 + $0x8] sm:$0xff] }
   0x9   :  { %v32_v3 = vld.sshfl [vmem:[#allocation1] sm:$0xff pattern:$0x75316420]  ;;  %v33_v4 = vld.sshfl [vmem:[#allocation1 + $0x8] sm:$0xff pattern:$0x75316420] }
   0xa   :  { %93 = vst [vmem:[#allocation1] ss:$2 sm:$0xff] %v26_v1  ;;  %454 = vmatpush.msk.msra.mxu0 %vm41_vm0, %v32_v3  ;;  %457 = vmatpush.msk.msra.mxu1 %vm41_vm0, %v33_v4 }
   0xb   :  { %455 = vmatmul.msk.f32.vlgmr.msra.gmra.mxu0 %vm34_vm1, %v27_v2  ;;  %458 = vmatmul.msk.f32.vlgmr.msra.gmra.mxu1 %vm34_vm1, %v27_v2  ;;  %v489_v45 = vpop.eup %488 }
   0xc   :  { %v312_v46 = vmul.f32 512.0, %v489_v45  ;;  %vm316_vm2 = vweird.f32 %v489_v45 }
   0xe   :  { %v313_v47 = vsub.f32 1.0, %v312_v46 }
  0x10   :  { %v314_v48 = vmul.f32 %v489_v45, %v313_v47  ;;  %v378_v47 = vld [vmem:[%s675_s5] sm:$0xff] }
  0x11   :  { %v94_v8 = vld.sshfl [vmem:[#allocation1] sm:$0xff pattern:$0x75316420]  ;;  %v95_v9 = vld.sshfl [vmem:[#allocation1 + $0x8] sm:$0xff pattern:$0x75316420] }
  0x12   :  { %460 = vmatpush.msk.msra.mxu2 %vm41_vm0, %v94_v8  ;;  %463 = vmatpush.msk.msra.mxu3 %vm41_vm0, %v95_v9  ;;  %165 = vst [vmem:[#allocation1] ss:$2 sm:$0xff] %v467_v5  ;;  %v315_v49 = vadd.f32 %v489_v45, %v314_v48 }
  0x13   :  { %461 = vmatmul.msk.f32.vlgmr.msra.gmra.mxu2 %vm34_vm1, %v24_v6  ;;  %464 = vmatmul.msk.f32.vlgmr.msra.gmra.mxu3 %vm34_vm1, %v24_v6 }
  0x14   :  { %456 = vmatmul.msk.f32.gmra.mxu0 %vm34_vm1, %v28_v7  ;;  %459 = vmatmul.msk.f32.gmra.mxu1 %vm34_vm1, %v28_v7  ;;  %v317_v51 = vsel %vm316_vm2, %v489_v45, %v315_v49 }
  0x19   :  { %v166_v12 = vld.sshfl [vmem:[#allocation1] sm:$0xff pattern:$0x75316420]  ;;  %v167_v13 = vld.sshfl [vmem:[#allocation1 + $0x8] sm:$0xff pattern:$0x75316420] }
  0x1a   :  { %225 = vst [vmem:[#allocation1] ss:$2 sm:$0xff] %v466_v10  ;;  %468 = vmatpush.msk.msrb.mxu0 %vm41_vm0, %v166_v12  ;;  %471 = vmatpush.msk.msrb.mxu1 %vm41_vm0, %v167_v13 }
  0x1b   :  { %462 = vmatmul.msk.f32.gmra.mxu2 %vm34_vm1, %v25_v11  ;;  %465 = vmatmul.msk.f32.gmra.mxu3 %vm34_vm1, %v25_v11 }
  0x1c   :  { %469 = vmatmul.msk.f32.vlgmr.msrb.gmra.mxu0 %vm34_vm1, %v27_v2  ;;  %472 = vmatmul.msk.f32.vlgmr.msrb.gmra.mxu1 %vm34_vm1, %v27_v2 }
  0x21   :  { %v226_v14 = vld.sshfl [vmem:[#allocation1] sm:$0xff pattern:$0x75316420]  ;;  %v227_v15 = vld.sshfl [vmem:[#allocation1 + $0x8] sm:$0xff pattern:$0x75316420] }
  0x22   :  { %474 = vmatpush.msk.msrb.mxu2 %vm41_vm0, %v226_v14  ;;  %477 = vmatpush.msk.msrb.mxu3 %vm41_vm0, %v227_v15  ;;  %v521_v15 = vmov 0  }
  0x23   :  { %475 = vmatmul.msk.f32.vlgmr.msrb.gmra.mxu2 %vm34_vm1, %v24_v6  ;;  %478 = vmatmul.msk.f32.vlgmr.msrb.gmra.mxu3 %vm34_vm1, %v24_v6 }
  0x24   :  { %470 = vmatmul.msk.f32.gmra.mxu0 %vm34_vm1, %v28_v7  ;;  %473 = vmatmul.msk.f32.gmra.mxu1 %vm34_vm1, %v28_v7 }
  0x25   :  { %485 = vset.pattern.permute.xlu2 %v521_v15  ;;  %487 = vset.pattern.permute.xlu1 %v521_v15 }
  0x26   :  { %486 = vset.pattern.permute.xlu0 %v521_v15 }
  0x2b   :  { %476 = vmatmul.msk.f32.gmra.mxu2 %vm34_vm1, %v25_v11  ;;  %479 = vmatmul.msk.f32.gmra.mxu3 %vm34_vm1, %v25_v11 }
  0x88   :  { %v63_v16 = vpop.f32.mrf.mxu0  ;;  %v86_v17 = vpop.f32.mrf.mxu1 }
  0x91   :  { %v66_v22 = vpop.f32.mrf.mxu0  ;;  %v89_v23 = vpop.f32.mrf.mxu1 }
  0x96   :  { %v123_v18 = vpop.f32.mrf.mxu2  ;;  %v146_v19 = vpop.f32.mrf.mxu3 }
  0x97   :  { %v608_v20 = vadd.f32 %v123_v18, %v63_v16  ;;  %v610_v21 = vadd.f32 %v146_v19, %v86_v17 }
  0x99   :  { %v297_v24 = vadd.f32 %v610_v21, %v608_v20  ;;  %v195_v30 = vpop.f32.mrf.mxu0  ;;  %v218_v31 = vpop.f32.mrf.mxu1 }
  0x9b   :  { %298 = vadd.xlane.f32.xlu0 %v297_v24 }
  0x9e   :  { %v126_v25 = vpop.f32.mrf.mxu2  ;;  %v149_v26 = vpop.f32.mrf.mxu3 }
  0x9f   :  { %v614_v27 = vadd.f32 %v126_v25, %v66_v22  ;;  %v616_v28 = vadd.f32 %v149_v26, %v89_v23 }
  0xa1   :  { %v300_v29 = vadd.f32 %v616_v28, %v614_v27  ;;  %v198_v37 = vpop.f32.mrf.mxu0  ;;  %v221_v38 = vpop.f32.mrf.mxu1 }
  0xa3   :  { %301 = vadd.xlane.f32.xlu0 %v300_v29 }
  0xa6   :  { %v255_v32 = vpop.f32.mrf.mxu2  ;;  %v278_v33 = vpop.f32.mrf.mxu3 }
  0xa7   :  { %v620_v34 = vadd.f32 %v255_v32, %v195_v30  ;;  %v622_v35 = vadd.f32 %v278_v33, %v218_v31 }
  0xa9   :  { %v303_v36 = vadd.f32 %v622_v35, %v620_v34 }
  0xab   :  { %304 = vadd.xlane.f32.xlu1 %v303_v36 }
  0xae   :  { %v258_v39 = vpop.f32.mrf.mxu2  ;;  %v281_v40 = vpop.f32.mrf.mxu3 }
  0xaf   :  { %v626_v41 = vadd.f32 %v258_v39, %v198_v37  ;;  %v628_v42 = vadd.f32 %v281_v40, %v221_v38  ;;  %v352_v39 = vld [vmem:[%s674_s4] sm:$0xff] }
  0xb1   :  { %v306_v43 = vadd.f32 %v628_v42, %v626_v41 }
  0xb3   :  { %307 = vadd.xlane.f32.xlu1 %v306_v43 }
 0x10e   :  { %v299_v50 = vpop.xlane.xlu0 %298 }
 0x116   :  { %v302_v63 = vpop.xlane.xlu0 %301 }
 0x11e   :  { %v305_v52 = vpop.xlane.xlu1 %304 }
 0x11f   :  { %v309_v53 = vadd.f32 %v305_v52, %v299_v50 }
 0x121   :  { %v632_v54 = vmul.f32 %v317_v51, %v309_v53 }
 0x123   :  { %v324_v55 = vsub.f32 %v620_v34, %v632_v54  ;;  %v325_v56 = vsub.f32 %v622_v35, %v632_v54  ;;  %v320_v57 = vsub.f32 %v608_v20, %v632_v54  ;;  %v321_v58 = vsub.f32 %v610_v21, %v632_v54 }
 0x125   :  { %v332_v59 = vmul.f32 %v324_v55, %v324_v55  ;;  %v333_v60 = vmul.f32 %v325_v56, %v325_v56  ;;  %v328_v61 = vmul.f32 %v320_v57, %v320_v57  ;;  %v329_v62 = vmul.f32 %v321_v58, %v321_v58  ;;  %v379_v56 = vld [vmem:[%s675_s5 + $0x8] sm:$0xff] }
 0x126   :  { %v308_v0 = vpop.xlane.xlu1 %307 }
 0x127   :  { %v310_v1 = vadd.f32 %v308_v0, %v302_v63  ;;  %v342_v2 = vadd.f32 %v333_v60, %v332_v59  ;;  %v336_v3 = vadd.f32 %v329_v62, %v328_v61 }
 0x129   :  { %v319_v4 = vmul.f32 %v317_v51, %v310_v1  ;;  %343 = vadd.xlane.f32.xlu0 %v342_v2  ;;  %337 = vadd.xlane.f32.xlu2 %v336_v3 }
 0x12b   :  { %v326_v5 = vsub.f32 %v626_v41, %v319_v4  ;;  %v327_v6 = vsub.f32 %v628_v42, %v319_v4  ;;  %v322_v7 = vsub.f32 %v614_v27, %v319_v4  ;;  %v323_v8 = vsub.f32 %v616_v28, %v319_v4 }
 0x12d   :  { %v334_v9 = vmul.f32 %v326_v5, %v326_v5  ;;  %v335_v10 = vmul.f32 %v327_v6, %v327_v6  ;;  %v330_v11 = vmul.f32 %v322_v7, %v322_v7  ;;  %v331_v12 = vmul.f32 %v323_v8, %v323_v8 }
 0x12f   :  { %v345_v13 = vadd.f32 %v335_v10, %v334_v9  ;;  %v339_v14 = vadd.f32 %v331_v12, %v330_v11 }
 0x131   :  { %346 = vadd.xlane.f32.xlu1 %v345_v13  ;;  %340 = vadd.xlane.f32.xlu2 %v339_v14 }
 0x19c   :  { %v338_v16 = vpop.xlane.xlu2 %337  ;;  %v344_v17 = vpop.xlane.xlu0 %343 }
 0x19d   :  { %v348_v18 = vadd.f32 %v344_v17, %v338_v16 }
 0x19f   :  { %v350_v19 = vmul.f32 %v348_v18, %v317_v51 }
 0x1a1   :  { %v354_v22 = vadd.f32 1e-05, %v350_v19 }
 0x1a3   :  { %490 = vrsqrt.f32 %v354_v22  ;;  %vm362_vm4 = vweird.f32 %v354_v22 }
 0x1a4   :  { %v347_v23 = vpop.xlane.xlu1 %346  ;;  %v341_v24 = vpop.xlane.xlu2 %340 }
 0x1a5   :  { %v349_v25 = vadd.f32 %v347_v23, %v341_v24 }
 0x1a7   :  { %v351_v26 = vmul.f32 %v349_v25, %v317_v51  ;;  %v353_v51 = vld [vmem:[%s674_s4 + $0x8] sm:$0xff]  ;;  %s522_s4 = smov [#allocation3]  }
 0x1a8   :  { %s440_s5 = sshll.u32 %s522_s4, 4  ;;  %s441_s5 = int_to_ptr.vmem [resolvable:$true] %s440_s5 }
 0x1a9   :  { %v491_v29 = vpop.eup %490  ;;  %v355_v30 = vadd.f32 1e-05, %v351_v26 }
 0x1aa   :  { %v357_v31 = vmul.f32 %v491_v29, %v354_v22  ;;  %vm363_vm3 = vweird.f32 %v491_v29 }
 0x1ab   :  { %492 = vrsqrt.f32 %v355_v30  ;;  %vm364_vm5 = vmor %vm362_vm4, %vm363_vm3  ;;  %vm372_vm7 = vweird.f32 %v355_v30 }
 0x1ac   :  { %v358_v32 = vmul.f32 %v491_v29, %v357_v31 }
 0x1ae   :  { %v359_v33 = vmul.f32 0.5, %v358_v32 }
 0x1b0   :  { %v360_v36 = vsub.f32 1.5, %v359_v33 }
 0x1b1   :  { %v493_v37 = vpop.eup %492 }
 0x1b2   :  { %v367_v38 = vmul.f32 %v493_v37, %v355_v30  ;;  %v361_v40 = vmul.f32 %v491_v29, %v360_v36  ;;  %vm373_vm6 = vweird.f32 %v493_v37 }
 0x1b3   :  { %vm374_vm8 = vmor %vm372_vm7, %vm373_vm6 }
 0x1b4   :  { %v368_v43 = vmul.f32 %v493_v37, %v367_v38  ;;  %v365_v44 = vsel %vm364_vm5, %v491_v29, %v361_v40 }
 0x1b5   :  { %v376_v45 = vmul.f32 %v365_v44, %v352_v39 }
 0x1b6   :  { %v369_v46 = vmul.f32 0.5, %v368_v43 }
 0x1b7   :  { %386 = vperm.xlu2 %485, %v376_v45   ;;  %v380_v48 = vmul.f32 %v376_v45, %v632_v54 }
 0x1b8   :  { %v370_v49 = vsub.f32 1.5, %v369_v46 }
 0x1b9   :  { %v382_v50 = vsub.f32 %v378_v47, %v380_v48 }
 0x1ba   :  { %v371_v52 = vmul.f32 %v493_v37, %v370_v49 }
 0x1bb   :  { %404 = vperm.xlu1 %487, %v382_v50  }
 0x1bc   :  { %v375_v53 = vsel %vm374_vm8, %v493_v37, %v371_v52 }
 0x1bd   :  { %v377_v55 = vmul.f32 %v375_v53, %v353_v51 }
 0x1bf   :  { %391 = vperm.xlu0 %486, %v377_v55   ;;  %v381_v57 = vmul.f32 %v377_v55, %v319_v4 }
 0x1c1   :  { %v383_v54 = vsub.f32 %v379_v56, %v381_v57 }
 0x1c3   :  { %409 = vperm.xlu2 %485, %v383_v54  }
 0x211   :  { %v387_v58 = vpop.permute.xlu2 %386 }
 0x212   :  { %v394_v59 = vmul.f32 %v387_v58, %v608_v20  ;;  %v395_v60 = vmul.f32 %v387_v58, %v610_v21  ;;  %v398_v61 = vmul.f32 %v387_v58, %v620_v34  ;;  %v399_v62 = vmul.f32 %v387_v58, %v622_v35 }
 0x21d   :  { %v410_v35 = vpop.permute.xlu2 %409 }
 0x22d   :  { %v405_v63 = vpop.permute.xlu1 %404 }
 0x22e   :  { %v412_v0 = vadd.f32 %v405_v63, %v394_v59  ;;  %v413_v1 = vadd.f32 %v405_v63, %v395_v60  ;;  %v416_v2 = vadd.f32 %v405_v63, %v398_v61  ;;  %v417_v3 = vadd.f32 %v405_v63, %v399_v62 }
 0x230   :  { %v420_v5 = vmax.f32 %v412_v0, 0.0  ;;  %v421_v6 = vmax.f32 %v413_v1, 0.0  ;;  %v424_v7 = vmax.f32 %v416_v2, 0.0  ;;  %v425_v4 = vmax.f32 %v417_v3, 0.0 }
 0x231   :  { %v392_v8 = vpop.permute.xlu0 %391 }
 0x232   :  { %428 = vst [vmem:[#allocation3] sm:$0xff] %v420_v5  ;;  %v396_v9 = vmul.f32 %v392_v8, %v614_v27  ;;  %v397_v20 = vmul.f32 %v392_v8, %v616_v28  ;;  %v400_v21 = vmul.f32 %v392_v8, %v626_v41  ;;  %v401_v34 = vmul.f32 %v392_v8, %v628_v42 }
 0x233   :  { %429 = vst [vmem:[#allocation3 + $0x8] sm:$0xff] %v421_v6 }
 0x234   :  { %432 = vst [vmem:[#allocation3 + $0x20] sm:$0xff] %v424_v7  ;;  %v414_v10 = vadd.f32 %v410_v35, %v396_v9  ;;  %v415_v11 = vadd.f32 %v410_v35, %v397_v20  ;;  %v418_v12 = vadd.f32 %v410_v35, %v400_v21  ;;  %v419_v13 = vadd.f32 %v410_v35, %v401_v34 }
 0x235   :  { %433 = vst [vmem:[#allocation3 + $0x28] sm:$0xff] %v425_v4 }
 0x236   :  { %v422_v27 = vmax.f32 %v414_v10, 0.0  ;;  %v423_v28 = vmax.f32 %v415_v11, 0.0  ;;  %v426_v14 = vmax.f32 %v418_v12, 0.0  ;;  %v427_v41 = vmax.f32 %v419_v13, 0.0 }
 0x238   :  { %430 = vst [vmem:[#allocation3 + $0x10] sm:$0xff] %v422_v27 }
 0x239   :  { %431 = vst [vmem:[#allocation3 + $0x18] sm:$0xff] %v423_v28 }
 0x23a   :  { %434 = vst [vmem:[#allocation3 + $0x30] sm:$0xff] %v426_v14 }
 0x23b   :  { %435 = vst [vmem:[#allocation3 + $0x38] sm:$0xff] %v427_v41 }
 0x23c   :  { %448 = dma.vmem_to_hbm [thread:$0]  %s441_s5, 1024, %s443_s19, [#allocation4], %s523_s20, %s523_s20, %s524_s21  }
 0x23d   :  { %518 = dma.done.wait [#allocation4], 1024  }
 0x23e   :  { %519 = vsyncadd [#allocation4], 4294966272 }
 0x23f   :  { %453 = vsyncpa [#allocation4], 1 }

</bundles_post_ra>
